<compile_context>
chip_gen: v7x
topology: tpu7x:2x2x1
jax: 0.10.0
libtpu: 0.0.40
codegen_flags: <defaults>
</compile_context>

<pallas_src>
import functools

import jax
import jax.numpy as jnp
from jax import lax
from jax.experimental import pallas as pl
from jax.experimental.pallas import tpu as pltpu


# ------------------------------- fused kernel -------------------------------
def _encoder_kernel(x_ref, w1_ref, b1_ref, w2_ref, b2_ref, o_ref, xin_ref, h_ref,
                    *, pool, k, pitch, l1, l2):
    # Stage 0: optional 2x2/stride-2 max-pool, producing flattened (S, Cin) rows.
    if pool:
        # x_ref: (1, 2, 2, S, Cin); x_ref[0, b, d] holds pixel (2y+b, 2x+d) at flat
        # row y*Wp + x.  Pool = elementwise max over the 4 (b, d) slabs.
        xin_ref[...] = jnp.maximum(
            jnp.maximum(x_ref[0, 0, 0], x_ref[0, 0, 1]),
            jnp.maximum(x_ref[0, 1, 0], x_ref[0, 1, 1]))
    else:
        xin_ref[...] = x_ref[0]                                   # (S, Cin)

    # Stage 1: conv3x3 (VALID) + bias + ReLU as k*k whole-image matmuls.
    acc = None
    for dy in range(k):
        for dx in range(k):
            win = xin_ref[pl.ds(dy * pitch + dx, l1), :]          # (L1, Cin)
            d = jnp.dot(win, w1_ref[dy, dx],
                        preferred_element_type=jnp.float32)
            acc = d if acc is None else acc + d
    h_ref[...] = jnp.maximum(acc + b1_ref[...], 0.0)              # bias broadcast once

    # Stage 2: conv3x3 (VALID) + bias + ReLU on the resident intermediate.
    acc = None
    for dy in range(k):
        for dx in range(k):
            win = h_ref[pl.ds(dy * pitch + dx, l2), :]            # (L2, Cout)
            d = jnp.dot(win, w2_ref[dy, dx],
                        preferred_element_type=jnp.float32)
            acc = d if acc is None else acc + d
    o_ref[0] = jnp.maximum(acc + b2_ref[...], 0.0).astype(o_ref.dtype)


# ------------------------------- public wrapper ------------------------------
def encoder_block(x_nchw, params, pos, k=3):
    """Equivalent of EncoderBlock.forward. x_nchw: (N, Cin, H, W) float32."""
    w1, b1, w2, b2 = params
    n, cin, h, w = x_nchw.shape
    cout = w1.shape[-1]
    pool = (pos == "inner")

    x = jnp.transpose(x_nchw, (0, 2, 3, 1))                       # NCHW -> NHWC

    if pool:
        assert h % 2 == 0 and w % 2 == 0, "maxpool 2x2/s2 needs even H, W"
        hp, wp = h // 2, w // 2
        # (N,Hp,2,Wp,2,C) -> (N,2,2,Hp*Wp,C): pixel (2y+b, 2x+d) at [n, b, d, y*Wp+x].
        x_in = jnp.transpose(x.reshape(n, hp, 2, wp, 2, cin),
                             (0, 2, 4, 1, 3, 5)).reshape(n, 2, 2, hp * wp, cin)
        in_block = (1, 2, 2, hp * wp, cin)
        in_map = lambda b: (b, 0, 0, 0, 0)
    else:
        hp, wp = h, w
        x_in = x.reshape(n, h * w, cin)                           # free reshape
        in_block = (1, h * w, cin)
        in_map = lambda b: (b, 0, 0)

    s = hp * wp
    c1h, c1w = hp - (k - 1), wp - (k - 1)                         # after conv1
    c2h, c2w = c1h - (k - 1), c1w - (k - 1)                       # after conv2
    assert c2h >= 1 and c2w >= 1, "image too small for two VALID 3x3 convs"
    l1 = (c1h - 1) * wp + c1w       # flat rows computed by conv1 (pitch = wp)
    l2 = (c2h - 1) * wp + c2w       # flat rows computed by conv2

    kern = functools.partial(_encoder_kernel, pool=pool, k=k, pitch=wp, l1=l1, l2=l2)
    out_flat = pl.pallas_call(
        kern,
        out_shape=jax.ShapeDtypeStruct((n, l2, cout), x.dtype),
        grid=(n,),
        in_specs=[
            pl.BlockSpec(in_block, in_map),
            pl.BlockSpec((k, k, cin, cout), lambda b: (0, 0, 0, 0)),
            pl.BlockSpec((1, cout), lambda b: (0, 0)),
            pl.BlockSpec((k, k, cout, cout), lambda b: (0, 0, 0, 0)),
            pl.BlockSpec((1, cout), lambda b: (0, 0)),
        ],
        out_specs=pl.BlockSpec((1, l2, cout), lambda b: (b, 0, 0)),
        scratch_shapes=[
            pltpu.VMEM((s, cin), jnp.float32),     # pooled / flattened input rows
            pltpu.VMEM((l1, cout), jnp.float32),   # conv1 activation (stays in VMEM)
        ],
        compiler_params=pltpu.CompilerParams(dimension_semantics=("parallel",)),
    )(x_in, w1, b1.reshape(1, cout), w2, b2.reshape(1, cout))

    # Strip the garbage rows (flat x >= c2w) introduced by the flat-pitch trick.
    out = jnp.pad(out_flat, ((0, 0), (0, c2h * wp - l2), (0, 0)))
    out = out.reshape(n, c2h, wp, cout)[:, :, :c2w, :]            # (N, c2h, c2w, Cout)
    return jnp.transpose(out, (0, 3, 1, 2))                       # NHWC -> NCHW


# ------------------------------ pure-JAX reference ---------------------------
def encoder_block_ref(x_nchw, params, pos):
    w1, b1, w2, b2 = params
    x = jnp.transpose(x_nchw, (0, 2, 3, 1))
    if pos == "inner":
        x = lax.reduce_window(x, -jnp.inf, lax.max,
                              (1, 2, 2, 1), (1, 2, 2, 1), "VALID")
    for wgt, bias in ((w1, b1), (w2, b2)):
        x = lax.conv_general_dilated(x, wgt, (1, 1), "VALID",
                                     dimension_numbers=("NHWC", "HWIO", "NHWC"))
        x = jnp.maximum(x + bias.reshape(1, 1, 1, -1), 0.0)
    return jnp.transpose(x, (0, 3, 1, 2))


if __name__ == "__main__":
    N, CIN, COUT, H, W, K = 2, 4, 8, 16, 16, 3
    key = jax.random.PRNGKey(0)
    kx, k1, k2, k3, k4 = jax.random.split(key, 5)
    x = jax.random.normal(kx, (N, CIN, H, W), jnp.float32)
    w1 = jax.random.normal(k1, (K, K, CIN, COUT), jnp.float32) * 0.2
    b1 = jax.random.normal(k2, (COUT,), jnp.float32) * 0.1
    w2 = jax.random.normal(k3, (K, K, COUT, COUT), jnp.float32) * 0.2
    b2 = jax.random.normal(k4, (COUT,), jnp.float32) * 0.1
    params = (w1, b1, w2, b2)

    ok = True
    for pos in ("inner", "outer"):
        out = jax.block_until_ready(encoder_block(x, params, pos))
        ref = jax.block_until_ready(encoder_block_ref(x, params, pos))
        if out.shape != ref.shape:
            ok = False
            print(f"pos={pos}: shape mismatch {out.shape} vs {ref.shape}")
            continue
        err = float(jnp.max(jnp.abs(out - ref)))
        if err > 1e-3:
            ok = False
            print(f"pos={pos}: max abs error {err}")
    if ok:
        print("KERNEL_OK")
</pallas_src>

<mosaic_0001>
module attributes {stable_mosaic.version = 11 : i64} {
  func.func @_encoder_kernel(%arg0: i32, %arg1: memref<1x2x2x64x4xf32, #tpu.memory_space<vmem>>, %arg2: memref<3x3x4x8xf32, #tpu.memory_space<vmem>>, %arg3: memref<1x8xf32, #tpu.memory_space<vmem>>, %arg4: memref<3x3x8x8xf32, #tpu.memory_space<vmem>>, %arg5: memref<1x8xf32, #tpu.memory_space<vmem>>, %arg6: memref<1x28x8xf32, #tpu.memory_space<vmem>>, %arg7: memref<64x4xf32, #tpu.memory_space<vmem>>, %arg8: memref<46x8xf32, #tpu.memory_space<vmem>>) attributes {dimension_semantics = [#tpu.dimension_semantics<parallel>], iteration_bounds = array<i64: 2>, scalar_prefetch = 0 : i64, scratch_operands = 2 : i64, tpu.core_type = #tpu.core_type<tc>, window_params = [{transform_indices = @transform_0, window_bounds = array<i64: 1, 2, 2, 64, 4>}, {pipeline_mode = #tpu.pipeline_mode<synchronous>, transform_indices = @transform_1, window_bounds = array<i64: 3, 3, 4, 8>}, {pipeline_mode = #tpu.pipeline_mode<synchronous>, transform_indices = @transform_2, window_bounds = array<i64: 1, 8>}, {pipeline_mode = #tpu.pipeline_mode<synchronous>, transform_indices = @transform_3, window_bounds = array<i64: 3, 3, 8, 8>}, {pipeline_mode = #tpu.pipeline_mode<synchronous>, transform_indices = @transform_4, window_bounds = array<i64: 1, 8>}, {transform_indices = @transform_5, window_bounds = array<i64: 1, 28, 8>}]} {
    %c0 = arith.constant 0 : index
    %c0_0 = arith.constant 0 : index
    %c0_1 = arith.constant 0 : index
    %c0_2 = arith.constant 0 : index
    %c0_3 = arith.constant 0 : index
    %0 = vector.load %arg1[%c0, %c0_0, %c0_1, %c0_2, %c0_3] : memref<1x2x2x64x4xf32, #tpu.memory_space<vmem>>, vector<1x1x1x64x4xf32>
    %1 = vector.shape_cast %0 : vector<1x1x1x64x4xf32> to vector<64x4xf32>
    %c0_4 = arith.constant 0 : index
    %c0_5 = arith.constant 0 : index
    %c1 = arith.constant 1 : index
    %c0_6 = arith.constant 0 : index
    %c0_7 = arith.constant 0 : index
    %2 = vector.load %arg1[%c0_4, %c0_5, %c1, %c0_6, %c0_7] : memref<1x2x2x64x4xf32, #tpu.memory_space<vmem>>, vector<1x1x1x64x4xf32>
    %3 = vector.shape_cast %2 : vector<1x1x1x64x4xf32> to vector<64x4xf32>
    %4 = arith.maximumf %1, %3 : vector<64x4xf32>
    %c0_8 = arith.constant 0 : index
    %c1_9 = arith.constant 1 : index
    %c0_10 = arith.constant 0 : index
    %c0_11 = arith.constant 0 : index
    %c0_12 = arith.constant 0 : index
    %5 = vector.load %arg1[%c0_8, %c1_9, %c0_10, %c0_11, %c0_12] : memref<1x2x2x64x4xf32, #tpu.memory_space<vmem>>, vector<1x1x1x64x4xf32>
    %6 = vector.shape_cast %5 : vector<1x1x1x64x4xf32> to vector<64x4xf32>
    %c0_13 = arith.constant 0 : index
    %c1_14 = arith.constant 1 : index
    %c1_15 = arith.constant 1 : index
    %c0_16 = arith.constant 0 : index
    %c0_17 = arith.constant 0 : index
    %7 = vector.load %arg1[%c0_13, %c1_14, %c1_15, %c0_16, %c0_17] : memref<1x2x2x64x4xf32, #tpu.memory_space<vmem>>, vector<1x1x1x64x4xf32>
    %8 = vector.shape_cast %7 : vector<1x1x1x64x4xf32> to vector<64x4xf32>
    %9 = arith.maximumf %6, %8 : vector<64x4xf32>
    %10 = arith.maximumf %4, %9 : vector<64x4xf32>
    %c0_18 = arith.constant 0 : index
    %c0_19 = arith.constant 0 : index
    %11 = vector.load %arg7[%c0_18, %c0_19] : memref<64x4xf32, #tpu.memory_space<vmem>>, vector<64x4xf32>
    tpu.vector_store %arg7[%c0_18, %c0_19], %10 {strides = array<i32>} : memref<64x4xf32, #tpu.memory_space<vmem>>, vector<64x4xf32>,
    %c0_20 = arith.constant 0 : index
    %c0_21 = arith.constant 0 : index
    %12 = vector.load %arg7[%c0_20, %c0_21] : memref<64x4xf32, #tpu.memory_space<vmem>>, vector<46x4xf32>
    %c0_22 = arith.constant 0 : index
    %c0_23 = arith.constant 0 : index
    %c0_24 = arith.constant 0 : index
    %c0_25 = arith.constant 0 : index
    %13 = vector.load %arg2[%c0_22, %c0_23, %c0_24, %c0_25] : memref<3x3x4x8xf32, #tpu.memory_space<vmem>>, vector<1x1x4x8xf32>
    %14 = vector.shape_cast %13 : vector<1x1x4x8xf32> to vector<4x8xf32>
    %cst = arith.constant dense<0.000000e+00> : vector<46x8xf32>
    %15 = tpu.matmul %12, %14, %cst {dimension_numbers = #tpu.dot_dimension_numbers<[1], [0], [0], [1], [0, 0, 1, 1], [], []>} : vector<46x4xf32>, vector<4x8xf32>, vector<46x8xf32> -> vector<46x8xf32>
    %c1_26 = arith.constant 1 : index
    %c0_27 = arith.constant 0 : index
    %16 = vector.load %arg7[%c1_26, %c0_27] : memref<64x4xf32, #tpu.memory_space<vmem>>, vector<46x4xf32>
    %c0_28 = arith.constant 0 : index
    %c1_29 = arith.constant 1 : index
    %c0_30 = arith.constant 0 : index
    %c0_31 = arith.constant 0 : index
    %17 = vector.load %arg2[%c0_28, %c1_29, %c0_30, %c0_31] : memref<3x3x4x8xf32, #tpu.memory_space<vmem>>, vector<1x1x4x8xf32>
    %18 = vector.shape_cast %17 : vector<1x1x4x8xf32> to vector<4x8xf32>
    %cst_32 = arith.constant dense<0.000000e+00> : vector<46x8xf32>
    %19 = tpu.matmul %16, %18, %cst_32 {dimension_numbers = #tpu.dot_dimension_numbers<[1], [0], [0], [1], [0, 0, 1, 1], [], []>} : vector<46x4xf32>, vector<4x8xf32>, vector<46x8xf32> -> vector<46x8xf32>
    %20 = arith.addf %15, %19 : vector<46x8xf32>
    %c2 = arith.constant 2 : index
    %c0_33 = arith.constant 0 : index
    %21 = vector.load %arg7[%c2, %c0_33] : memref<64x4xf32, #tpu.memory_space<vmem>>, vector<46x4xf32>
    %c0_34 = arith.constant 0 : index
    %c2_35 = arith.constant 2 : index
    %c0_36 = arith.constant 0 : index
    %c0_37 = arith.constant 0 : index
    %22 = vector.load %arg2[%c0_34, %c2_35, %c0_36, %c0_37] : memref<3x3x4x8xf32, #tpu.memory_space<vmem>>, vector<1x1x4x8xf32>
    %23 = vector.shape_cast %22 : vector<1x1x4x8xf32> to vector<4x8xf32>
    %cst_38 = arith.constant dense<0.000000e+00> : vector<46x8xf32>
    %24 = tpu.matmul %21, %23, %cst_38 {dimension_numbers = #tpu.dot_dimension_numbers<[1], [0], [0], [1], [0, 0, 1, 1], [], []>} : vector<46x4xf32>, vector<4x8xf32>, vector<46x8xf32> -> vector<46x8xf32>
    %25 = arith.addf %20, %24 : vector<46x8xf32>
    %c8 = arith.constant 8 : index
    %c0_39 = arith.constant 0 : index
    %26 = vector.load %arg7[%c8, %c0_39] : memref<64x4xf32, #tpu.memory_space<vmem>>, vector<46x4xf32>
    %c1_40 = arith.constant 1 : index
    %c0_41 = arith.constant 0 : index
    %c0_42 = arith.constant 0 : index
    %c0_43 = arith.constant 0 : index
    %27 = vector.load %arg2[%c1_40, %c0_41, %c0_42, %c0_43] : memref<3x3x4x8xf32, #tpu.memory_space<vmem>>, vector<1x1x4x8xf32>
    %28 = vector.shape_cast %27 : vector<1x1x4x8xf32> to vector<4x8xf32>
    %cst_44 = arith.constant dense<0.000000e+00> : vector<46x8xf32>
    %29 = tpu.matmul %26, %28, %cst_44 {dimension_numbers = #tpu.dot_dimension_numbers<[1], [0], [0], [1], [0, 0, 1, 1], [], []>} : vector<46x4xf32>, vector<4x8xf32>, vector<46x8xf32> -> vector<46x8xf32>
    %30 = arith.addf %25, %29 : vector<46x8xf32>
    %c9 = arith.constant 9 : index
    %c0_45 = arith.constant 0 : index
    %31 = vector.load %arg7[%c9, %c0_45] : memref<64x4xf32, #tpu.memory_space<vmem>>, vector<46x4xf32>
    %c1_46 = arith.constant 1 : index
    %c1_47 = arith.constant 1 : index
    %c0_48 = arith.constant 0 : index
    %c0_49 = arith.constant 0 : index
    %32 = vector.load %arg2[%c1_46, %c1_47, %c0_48, %c0_49] : memref<3x3x4x8xf32, #tpu.memory_space<vmem>>, vector<1x1x4x8xf32>
    %33 = vector.shape_cast %32 : vector<1x1x4x8xf32> to vector<4x8xf32>
    %cst_50 = arith.constant dense<0.000000e+00> : vector<46x8xf32>
    %34 = tpu.matmul %31, %33, %cst_50 {dimension_numbers = #tpu.dot_dimension_numbers<[1], [0], [0], [1], [0, 0, 1, 1], [], []>} : vector<46x4xf32>, vector<4x8xf32>, vector<46x8xf32> -> vector<46x8xf32>
    %35 = arith.addf %30, %34 : vector<46x8xf32>
    %c10 = arith.constant 10 : index
    %c0_51 = arith.constant 0 : index
    %36 = vector.load %arg7[%c10, %c0_51] : memref<64x4xf32, #tpu.memory_space<vmem>>, vector<46x4xf32>
    %c1_52 = arith.constant 1 : index
    %c2_53 = arith.constant 2 : index
    %c0_54 = arith.constant 0 : index
    %c0_55 = arith.constant 0 : index
    %37 = vector.load %arg2[%c1_52, %c2_53, %c0_54, %c0_55] : memref<3x3x4x8xf32, #tpu.memory_space<vmem>>, vector<1x1x4x8xf32>
    %38 = vector.shape_cast %37 : vector<1x1x4x8xf32> to vector<4x8xf32>
    %cst_56 = arith.constant dense<0.000000e+00> : vector<46x8xf32>
    %39 = tpu.matmul %36, %38, %cst_56 {dimension_numbers = #tpu.dot_dimension_numbers<[1], [0], [0], [1], [0, 0, 1, 1], [], []>} : vector<46x4xf32>, vector<4x8xf32>, vector<46x8xf32> -> vector<46x8xf32>
    %40 = arith.addf %35, %39 : vector<46x8xf32>
    %c16 = arith.constant 16 : index
    %c0_57 = arith.constant 0 : index
    %41 = vector.load %arg7[%c16, %c0_57] : memref<64x4xf32, #tpu.memory_space<vmem>>, vector<46x4xf32>
    %c2_58 = arith.constant 2 : index
    %c0_59 = arith.constant 0 : index
    %c0_60 = arith.constant 0 : index
    %c0_61 = arith.constant 0 : index
    %42 = vector.load %arg2[%c2_58, %c0_59, %c0_60, %c0_61] : memref<3x3x4x8xf32, #tpu.memory_space<vmem>>, vector<1x1x4x8xf32>
    %43 = vector.shape_cast %42 : vector<1x1x4x8xf32> to vector<4x8xf32>
    %cst_62 = arith.constant dense<0.000000e+00> : vector<46x8xf32>
    %44 = tpu.matmul %41, %43, %cst_62 {dimension_numbers = #tpu.dot_dimension_numbers<[1], [0], [0], [1], [0, 0, 1, 1], [], []>} : vector<46x4xf32>, vector<4x8xf32>, vector<46x8xf32> -> vector<46x8xf32>
    %45 = arith.addf %40, %44 : vector<46x8xf32>
    %c17 = arith.constant 17 : index
    %c0_63 = arith.constant 0 : index
    %46 = vector.load %arg7[%c17, %c0_63] : memref<64x4xf32, #tpu.memory_space<vmem>>, vector<46x4xf32>
    %c2_64 = arith.constant 2 : index
    %c1_65 = arith.constant 1 : index
    %c0_66 = arith.constant 0 : index
    %c0_67 = arith.constant 0 : index
    %47 = vector.load %arg2[%c2_64, %c1_65, %c0_66, %c0_67] : memref<3x3x4x8xf32, #tpu.memory_space<vmem>>, vector<1x1x4x8xf32>
    %48 = vector.shape_cast %47 : vector<1x1x4x8xf32> to vector<4x8xf32>
    %cst_68 = arith.constant dense<0.000000e+00> : vector<46x8xf32>
    %49 = tpu.matmul %46, %48, %cst_68 {dimension_numbers = #tpu.dot_dimension_numbers<[1], [0], [0], [1], [0, 0, 1, 1], [], []>} : vector<46x4xf32>, vector<4x8xf32>, vector<46x8xf32> -> vector<46x8xf32>
    %50 = arith.addf %45, %49 : vector<46x8xf32>
    %c18 = arith.constant 18 : index
    %c0_69 = arith.constant 0 : index
    %51 = vector.load %arg7[%c18, %c0_69] : memref<64x4xf32, #tpu.memory_space<vmem>>, vector<46x4xf32>
    %c2_70 = arith.constant 2 : index
    %c2_71 = arith.constant 2 : index
    %c0_72 = arith.constant 0 : index
    %c0_73 = arith.constant 0 : index
    %52 = vector.load %arg2[%c2_70, %c2_71, %c0_72, %c0_73] : memref<3x3x4x8xf32, #tpu.memory_space<vmem>>, vector<1x1x4x8xf32>
    %53 = vector.shape_cast %52 : vector<1x1x4x8xf32> to vector<4x8xf32>
    %cst_74 = arith.constant dense<0.000000e+00> : vector<46x8xf32>
    %54 = tpu.matmul %51, %53, %cst_74 {dimension_numbers = #tpu.dot_dimension_numbers<[1], [0], [0], [1], [0, 0, 1, 1], [], []>} : vector<46x4xf32>, vector<4x8xf32>, vector<46x8xf32> -> vector<46x8xf32>
    %55 = arith.addf %50, %54 : vector<46x8xf32>
    %c0_75 = arith.constant 0 : index
    %c0_76 = arith.constant 0 : index
    %56 = vector.load %arg3[%c0_75, %c0_76] : memref<1x8xf32, #tpu.memory_space<vmem>>, vector<1x8xf32>
    %57 = vector.broadcast %56 : vector<1x8xf32> to vector<46x8xf32>
    %58 = arith.addf %55, %57 : vector<46x8xf32>
    %cst_77 = arith.constant 0.000000e+00 : f32
    %59 = vector.broadcast %cst_77 : f32 to vector<46x8xf32>
    %60 = arith.maximumf %58, %59 : vector<46x8xf32>
    %c0_78 = arith.constant 0 : index
    %c0_79 = arith.constant 0 : index
    %61 = vector.load %arg8[%c0_78, %c0_79] : memref<46x8xf32, #tpu.memory_space<vmem>>, vector<46x8xf32>
    tpu.vector_store %arg8[%c0_78, %c0_79], %60 {strides = array<i32>} : memref<46x8xf32, #tpu.memory_space<vmem>>, vector<46x8xf32>,
    %c0_80 = arith.constant 0 : index
    %c0_81 = arith.constant 0 : index
    %62 = vector.load %arg8[%c0_80, %c0_81] : memref<46x8xf32, #tpu.memory_space<vmem>>, vector<28x8xf32>
    %c0_82 = arith.constant 0 : index
    %c0_83 = arith.constant 0 : index
    %c0_84 = arith.constant 0 : index
    %c0_85 = arith.constant 0 : index
    %63 = vector.load %arg4[%c0_82, %c0_83, %c0_84, %c0_85] : memref<3x3x8x8xf32, #tpu.memory_space<vmem>>, vector<1x1x8x8xf32>
    %64 = vector.shape_cast %63 : vector<1x1x8x8xf32> to vector<8x8xf32>
    %cst_86 = arith.constant dense<0.000000e+00> : vector<28x8xf32>
    %65 = tpu.matmul %62, %64, %cst_86 {dimension_numbers = #tpu.dot_dimension_numbers<[1], [0], [0], [1], [0, 0, 1, 1], [], []>} : vector<28x8xf32>, vector<8x8xf32>, vector<28x8xf32> -> vector<28x8xf32>
    %c1_87 = arith.constant 1 : index
    %c0_88 = arith.constant 0 : index
    %66 = vector.load %arg8[%c1_87, %c0_88] : memref<46x8xf32, #tpu.memory_space<vmem>>, vector<28x8xf32>
    %c0_89 = arith.constant 0 : index
    %c1_90 = arith.constant 1 : index
    %c0_91 = arith.constant 0 : index
    %c0_92 = arith.constant 0 : index
    %67 = vector.load %arg4[%c0_89, %c1_90, %c0_91, %c0_92] : memref<3x3x8x8xf32, #tpu.memory_space<vmem>>, vector<1x1x8x8xf32>
    %68 = vector.shape_cast %67 : vector<1x1x8x8xf32> to vector<8x8xf32>
    %cst_93 = arith.constant dense<0.000000e+00> : vector<28x8xf32>
    %69 = tpu.matmul %66, %68, %cst_93 {dimension_numbers = #tpu.dot_dimension_numbers<[1], [0], [0], [1], [0, 0, 1, 1], [], []>} : vector<28x8xf32>, vector<8x8xf32>, vector<28x8xf32> -> vector<28x8xf32>
    %70 = arith.addf %65, %69 : vector<28x8xf32>
    %c2_94 = arith.constant 2 : index
    %c0_95 = arith.constant 0 : index
    %71 = vector.load %arg8[%c2_94, %c0_95] : memref<46x8xf32, #tpu.memory_space<vmem>>, vector<28x8xf32>
    %c0_96 = arith.constant 0 : index
    %c2_97 = arith.constant 2 : index
    %c0_98 = arith.constant 0 : index
    %c0_99 = arith.constant 0 : index
    %72 = vector.load %arg4[%c0_96, %c2_97, %c0_98, %c0_99] : memref<3x3x8x8xf32, #tpu.memory_space<vmem>>, vector<1x1x8x8xf32>
    %73 = vector.shape_cast %72 : vector<1x1x8x8xf32> to vector<8x8xf32>
    %cst_100 = arith.constant dense<0.000000e+00> : vector<28x8xf32>
    %74 = tpu.matmul %71, %73, %cst_100 {dimension_numbers = #tpu.dot_dimension_numbers<[1], [0], [0], [1], [0, 0, 1, 1], [], []>} : vector<28x8xf32>, vector<8x8xf32>, vector<28x8xf32> -> vector<28x8xf32>
    %75 = arith.addf %70, %74 : vector<28x8xf32>
    %c8_101 = arith.constant 8 : index
    %c0_102 = arith.constant 0 : index
    %76 = vector.load %arg8[%c8_101, %c0_102] : memref<46x8xf32, #tpu.memory_space<vmem>>, vector<28x8xf32>
    %c1_103 = arith.constant 1 : index
    %c0_104 = arith.constant 0 : index
    %c0_105 = arith.constant 0 : index
    %c0_106 = arith.constant 0 : index
    %77 = vector.load %arg4[%c1_103, %c0_104, %c0_105, %c0_106] : memref<3x3x8x8xf32, #tpu.memory_space<vmem>>, vector<1x1x8x8xf32>
    %78 = vector.shape_cast %77 : vector<1x1x8x8xf32> to vector<8x8xf32>
    %cst_107 = arith.constant dense<0.000000e+00> : vector<28x8xf32>
    %79 = tpu.matmul %76, %78, %cst_107 {dimension_numbers = #tpu.dot_dimension_numbers<[1], [0], [0], [1], [0, 0, 1, 1], [], []>} : vector<28x8xf32>, vector<8x8xf32>, vector<28x8xf32> -> vector<28x8xf32>
    %80 = arith.addf %75, %79 : vector<28x8xf32>
    %c9_108 = arith.constant 9 : index
    %c0_109 = arith.constant 0 : index
    %81 = vector.load %arg8[%c9_108, %c0_109] : memref<46x8xf32, #tpu.memory_space<vmem>>, vector<28x8xf32>
    %c1_110 = arith.constant 1 : index
    %c1_111 = arith.constant 1 : index
    %c0_112 = arith.constant 0 : index
    %c0_113 = arith.constant 0 : index
    %82 = vector.load %arg4[%c1_110, %c1_111, %c0_112, %c0_113] : memref<3x3x8x8xf32, #tpu.memory_space<vmem>>, vector<1x1x8x8xf32>
    %83 = vector.shape_cast %82 : vector<1x1x8x8xf32> to vector<8x8xf32>
    %cst_114 = arith.constant dense<0.000000e+00> : vector<28x8xf32>
    %84 = tpu.matmul %81, %83, %cst_114 {dimension_numbers = #tpu.dot_dimension_numbers<[1], [0], [0], [1], [0, 0, 1, 1], [], []>} : vector<28x8xf32>, vector<8x8xf32>, vector<28x8xf32> -> vector<28x8xf32>
    %85 = arith.addf %80, %84 : vector<28x8xf32>
    %c10_115 = arith.constant 10 : index
    %c0_116 = arith.constant 0 : index
    %86 = vector.load %arg8[%c10_115, %c0_116] : memref<46x8xf32, #tpu.memory_space<vmem>>, vector<28x8xf32>
    %c1_117 = arith.constant 1 : index
    %c2_118 = arith.constant 2 : index
    %c0_119 = arith.constant 0 : index
    %c0_120 = arith.constant 0 : index
    %87 = vector.load %arg4[%c1_117, %c2_118, %c0_119, %c0_120] : memref<3x3x8x8xf32, #tpu.memory_space<vmem>>, vector<1x1x8x8xf32>
    %88 = vector.shape_cast %87 : vector<1x1x8x8xf32> to vector<8x8xf32>
    %cst_121 = arith.constant dense<0.000000e+00> : vector<28x8xf32>
    %89 = tpu.matmul %86, %88, %cst_121 {dimension_numbers = #tpu.dot_dimension_numbers<[1], [0], [0], [1], [0, 0, 1, 1], [], []>} : vector<28x8xf32>, vector<8x8xf32>, vector<28x8xf32> -> vector<28x8xf32>
    %90 = arith.addf %85, %89 : vector<28x8xf32>
    %c16_122 = arith.constant 16 : index
    %c0_123 = arith.constant 0 : index
    %91 = vector.load %arg8[%c16_122, %c0_123] : memref<46x8xf32, #tpu.memory_space<vmem>>, vector<28x8xf32>
    %c2_124 = arith.constant 2 : index
    %c0_125 = arith.constant 0 : index
    %c0_126 = arith.constant 0 : index
    %c0_127 = arith.constant 0 : index
    %92 = vector.load %arg4[%c2_124, %c0_125, %c0_126, %c0_127] : memref<3x3x8x8xf32, #tpu.memory_space<vmem>>, vector<1x1x8x8xf32>
    %93 = vector.shape_cast %92 : vector<1x1x8x8xf32> to vector<8x8xf32>
    %cst_128 = arith.constant dense<0.000000e+00> : vector<28x8xf32>
    %94 = tpu.matmul %91, %93, %cst_128 {dimension_numbers = #tpu.dot_dimension_numbers<[1], [0], [0], [1], [0, 0, 1, 1], [], []>} : vector<28x8xf32>, vector<8x8xf32>, vector<28x8xf32> -> vector<28x8xf32>
    %95 = arith.addf %90, %94 : vector<28x8xf32>
    %c17_129 = arith.constant 17 : index
    %c0_130 = arith.constant 0 : index
    %96 = vector.load %arg8[%c17_129, %c0_130] : memref<46x8xf32, #tpu.memory_space<vmem>>, vector<28x8xf32>
    %c2_131 = arith.constant 2 : index
    %c1_132 = arith.constant 1 : index
    %c0_133 = arith.constant 0 : index
    %c0_134 = arith.constant 0 : index
    %97 = vector.load %arg4[%c2_131, %c1_132, %c0_133, %c0_134] : memref<3x3x8x8xf32, #tpu.memory_space<vmem>>, vector<1x1x8x8xf32>
    %98 = vector.shape_cast %97 : vector<1x1x8x8xf32> to vector<8x8xf32>
    %cst_135 = arith.constant dense<0.000000e+00> : vector<28x8xf32>
    %99 = tpu.matmul %96, %98, %cst_135 {dimension_numbers = #tpu.dot_dimension_numbers<[1], [0], [0], [1], [0, 0, 1, 1], [], []>} : vector<28x8xf32>, vector<8x8xf32>, vector<28x8xf32> -> vector<28x8xf32>
    %100 = arith.addf %95, %99 : vector<28x8xf32>
    %c18_136 = arith.constant 18 : index
    %c0_137 = arith.constant 0 : index
    %101 = vector.load %arg8[%c18_136, %c0_137] : memref<46x8xf32, #tpu.memory_space<vmem>>, vector<28x8xf32>
    %c2_138 = arith.constant 2 : index
    %c2_139 = arith.constant 2 : index
    %c0_140 = arith.constant 0 : index
    %c0_141 = arith.constant 0 : index
    %102 = vector.load %arg4[%c2_138, %c2_139, %c0_140, %c0_141] : memref<3x3x8x8xf32, #tpu.memory_space<vmem>>, vector<1x1x8x8xf32>
    %103 = vector.shape_cast %102 : vector<1x1x8x8xf32> to vector<8x8xf32>
    %cst_142 = arith.constant dense<0.000000e+00> : vector<28x8xf32>
    %104 = tpu.matmul %101, %103, %cst_142 {dimension_numbers = #tpu.dot_dimension_numbers<[1], [0], [0], [1], [0, 0, 1, 1], [], []>} : vector<28x8xf32>, vector<8x8xf32>, vector<28x8xf32> -> vector<28x8xf32>
    %105 = arith.addf %100, %104 : vector<28x8xf32>
    %c0_143 = arith.constant 0 : index
    %c0_144 = arith.constant 0 : index
    %106 = vector.load %arg5[%c0_143, %c0_144] : memref<1x8xf32, #tpu.memory_space<vmem>>, vector<1x8xf32>
    %107 = vector.broadcast %106 : vector<1x8xf32> to vector<28x8xf32>
    %108 = arith.addf %105, %107 : vector<28x8xf32>
    %cst_145 = arith.constant 0.000000e+00 : f32
    %109 = vector.broadcast %cst_145 : f32 to vector<28x8xf32>
    %110 = arith.maximumf %108, %109 : vector<28x8xf32>
    %c0_146 = arith.constant 0 : index
    %c0_147 = arith.constant 0 : index
    %c0_148 = arith.constant 0 : index
    %111 = vector.load %arg6[%c0_146, %c0_147, %c0_148] : memref<1x28x8xf32, #tpu.memory_space<vmem>>, vector<1x28x8xf32>
    %112 = vector.shape_cast %111 : vector<1x28x8xf32> to vector<28x8xf32>
    %113 = vector.shape_cast %110 : vector<28x8xf32> to vector<1x28x8xf32>
    tpu.vector_store %arg6[%c0_146, %c0_147, %c0_148], %113 {strides = array<i32>} : memref<1x28x8xf32, #tpu.memory_space<vmem>>, vector<1x28x8xf32>,
    return
  }
  func.func @transform_0(%arg0: i32) -> (i32, i32, i32, i32, i32) {
    %c0_i32 = arith.constant 0 : i32
    %c0_i32_0 = arith.constant 0 : i32
    %c0_i32_1 = arith.constant 0 : i32
    %c0_i32_2 = arith.constant 0 : i32
    %c0_i32_3 = arith.constant 0 : i32
    return %arg0, %c0_i32, %c0_i32_0, %c0_i32_1, %c0_i32_2 : i32, i32, i32, i32, i32
  }
  func.func @transform_1(%arg0: i32) -> (i32, i32, i32, i32) {
    %c0_i32 = arith.constant 0 : i32
    %c0_i32_0 = arith.constant 0 : i32
    %c0_i32_1 = arith.constant 0 : i32
    %c0_i32_2 = arith.constant 0 : i32
    %c0_i32_3 = arith.constant 0 : i32
    return %c0_i32, %c0_i32_0, %c0_i32_1, %c0_i32_2 : i32, i32, i32, i32
  }
  func.func @transform_2(%arg0: i32) -> (i32, i32) {
    %c0_i32 = arith.constant 0 : i32
    %c0_i32_0 = arith.constant 0 : i32
    %c0_i32_1 = arith.constant 0 : i32
    return %c0_i32, %c0_i32_0 : i32, i32
  }
  func.func @transform_3(%arg0: i32) -> (i32, i32, i32, i32) {
    %c0_i32 = arith.constant 0 : i32
    %c0_i32_0 = arith.constant 0 : i32
    %c0_i32_1 = arith.constant 0 : i32
    %c0_i32_2 = arith.constant 0 : i32
    %c0_i32_3 = arith.constant 0 : i32
    return %c0_i32, %c0_i32_0, %c0_i32_1, %c0_i32_2 : i32, i32, i32, i32
  }
  func.func @transform_4(%arg0: i32) -> (i32, i32) {
    %c0_i32 = arith.constant 0 : i32
    %c0_i32_0 = arith.constant 0 : i32
    %c0_i32_1 = arith.constant 0 : i32
    return %c0_i32, %c0_i32_0 : i32, i32
  }
  func.func @transform_5(%arg0: i32) -> (i32, i32, i32) {
    %c0_i32 = arith.constant 0 : i32
    %c0_i32_0 = arith.constant 0 : i32
    %c0_i32_1 = arith.constant 0 : i32
    return %arg0, %c0_i32, %c0_i32_0 : i32, i32, i32
  }
}

</mosaic_0001>

<bundles_post_ra>
// kernel: tpu_custom_call.1
= control target key start
LH: loop header
LB: loop body
LE: loop exit
PB: predicated region body
PF: predicated region fallthrough
CT: control target
= control target key end

     0   :  { %s3068_s18 = smov 0   ;;  %s3354_s0 = inlined_call_operand.vmem [shape: f32[2,2,2,64,4], index: 0, kind: input, shape index: {}]   ;;  %s3355_s1 = inlined_call_operand.vmem [shape: f32[3,3,4,8], index: 1, kind: input, shape index: {}]   ;;  %s3356_s2 = inlined_call_operand.vmem [shape: f32[1,8], index: 2, kind: input, shape index: {}]   ;;  %s3357_s3 = inlined_call_operand.vmem [shape: f32[3,3,8,8], index: 3, kind: input, shape index: {}]   ;;  %s3358_s4 = inlined_call_operand.vmem [shape: f32[1,8], index: 4, kind: input, shape index: {}]   ;;  %s3359_s5 = inlined_call_operand.vmem [shape: f32[2,28,8], index: 5, kind: output, shape index: {}]  }
   0x1 LB: > { %s2507_s19 = sadd.s32 4294967295, %s3036_s18   ;;  %p2511_p0 = scmp.ge.s32.totalorder %s3036_s18, 1  ;;  %s3036_s18 = sphi %s3068_s18, %s15_s18  }
   0x2   : > { %p187_p1 = scmp.lt.s32.totalorder %s3036_s18, 3 }
   0x4   : > { %p188_p2 = pnand %p2511_p0, %p187_p1 }
   0x5   : > { %v3079_v0 = vld [vmem:[%s3355_s1] sm:$0xf] (!%p188_p2)  ;;  %vm326_vm0 = vcmask (!%p188_p2), 1043456   ;;  %p215_p3 = scmp.lt.s32.totalorder (!%p188_p2), %s2507_s19, 1  ;;  %v3086_v1 = vld [vmem:[%s3355_s1 + $0x8] sm:$0xf] (!%p188_p2) }
   0x6   : > { %191 = sbr.rel (%p188_p2) target bundleno = 630 (0x276), region = 40  ;;  %2780 = vmatprep.subr.msk.mxu0 (!%p188_p2), %vm326_vm0, %v3079_v0  ;;  %v2540_v2 = vld [vmem:[%s3355_s1 + $0x4] sm:$0xf] (!%p188_p2)  ;;  %vm284_vm1 = vcmask (!%p188_p2), 31744   ;;  %v2563_v59 = vld [vmem:[%s3355_s1 + $0xc] sm:$0xf] (!%p188_p2) }
   0x7   : > { %2781 = vmatpush3.msk.msra.mxu0 (!%p188_p2), %vm326_vm0, %v3079_v0  ;;  %2769 = vmatprep.subr.msk.mxu1 (!%p188_p2), %vm326_vm0, %v2540_v2  ;;  %vm1470_vm2 = vcmask (!%p188_p2), 64512   ;;  %vm1476_vm3 = vcmask (!%p188_p2), 62464   ;;  %vm2450_vm4 = vcmask (!%p188_p2), 60416  }
   0x8   : > { %2791 = vmatprep.subr.msk.mxu0 (!%p188_p2), %vm326_vm0, %v3086_v1  ;;  %2770 = vmatpush3.msk.msra.mxu1 (!%p188_p2), %vm326_vm0, %v2540_v2 }
   0x9   : > { %2940 = vmatprep.subr.msk.mxu1 (!%p188_p2), %vm326_vm0, %v3079_v0 }
   0xd   : > { %s3361_s19 = smov (!%p215_p3, %s2507_s19), 1 }
   0xe   : > { %s2659_s26 = sshll.u32 %s3361_s19, 8  ;;  %s2660_s16 = sshll.u32 %s3361_s19, 5 }
   0xf   : > { %s3102_s29 = scalar_lea.vmem %s3354_s0, %s2659_s26  ;;  %s224_s21 = scalar_lea.vmem %s3359_s5, %s2660_s16 }
  0x10   : > { %v225_v3 = vld [vmem:[%s3102_s29] sm:$0xff]  ;;  %v226_v8 = vld [vmem:[%s3102_s29 + $0x8] sm:$0xff]  ;;  %v227_v14 = vld [vmem:[%s3102_s29 + $0x10] sm:$0xff] }
  0x11   : > { %v2516_v4 = vld [vmem:[%s3102_s29 + $0x40] sm:$0xff]  ;;  %v2517_v9 = vld [vmem:[%s3102_s29 + $0x48] sm:$0xff]  ;;  %v2518_v16 = vld [vmem:[%s3102_s29 + $0x50] sm:$0xff] }
  0x12   : > { %v2524_v5 = vld [vmem:[%s3102_s29 + $0x80] sm:$0xff]  ;;  %v242_v6 = vmax.f32 %v225_v3, %v2516_v4  ;;  %v243_v11 = vmax.f32 %v226_v8, %v2517_v9  ;;  %v2525_v12 = vld [vmem:[%s3102_s29 + $0x88] sm:$0xff]  ;;  %v2526_v17 = vld [vmem:[%s3102_s29 + $0x90] sm:$0xff]  ;;  %v244_v20 = vmax.f32 %v227_v14, %v2518_v16 }
  0x13   : > { %v2532_v7 = vld [vmem:[%s3102_s29 + $0xc0] sm:$0xff]  ;;  %v2533_v13 = vld [vmem:[%s3102_s29 + $0xc8] sm:$0xff]  ;;  %v2534_v18 = vld [vmem:[%s3102_s29 + $0xd0] sm:$0xff] }
  0x14   : > { %v268_v10 = vmax.f32 %v2524_v5, %v2532_v7  ;;  %v269_v15 = vmax.f32 %v2525_v12, %v2533_v13  ;;  %v270_v21 = vmax.f32 %v2526_v17, %v2534_v18  ;;  %v228_v22 = vld [vmem:[%s3102_s29 + $0x18] sm:$0xff]  ;;  %v229_v28 = vld [vmem:[%s3102_s29 + $0x20] sm:$0xff]  ;;  %v230_v35 = vld [vmem:[%s3102_s29 + $0x28] sm:$0xff] }
  0x15   : > { %v2519_v23 = vld [vmem:[%s3102_s29 + $0x58] sm:$0xff]  ;;  %v2520_v29 = vld [vmem:[%s3102_s29 + $0x60] sm:$0xff]  ;;  %v2521_v37 = vld [vmem:[%s3102_s29 + $0x68] sm:$0xff] }
  0x16   : > { %v276_v19 = vmax.f32 %v242_v6, %v268_v10  ;;  %v2527_v24 = vld [vmem:[%s3102_s29 + $0x98] sm:$0xff]  ;;  %v277_v25 = vmax.f32 %v243_v11, %v269_v15  ;;  %v245_v26 = vmax.f32 %v228_v22, %v2519_v23  ;;  %v278_v30 = vmax.f32 %v244_v20, %v270_v21  ;;  %v2528_v33 = vld [vmem:[%s3102_s29 + $0xa0] sm:$0xff]  ;;  %v2529_v38 = vld [vmem:[%s3102_s29 + $0xa8] sm:$0xff] }
  0x17   : > { %v2535_v27 = vld [vmem:[%s3102_s29 + $0xd8] sm:$0xff]  ;;  %v246_v32 = vmax.f32 %v229_v28, %v2520_v29  ;;  %v2536_v34 = vld [vmem:[%s3102_s29 + $0xe0] sm:$0xff]  ;;  %v2537_v39 = vld [vmem:[%s3102_s29 + $0xe8] sm:$0xff]  ;;  %v247_v41 = vmax.f32 %v230_v35, %v2521_v37 }
  0x18   : > { %285 = vst.msk [vmem:[#allocation2] sm:$0xff] %vm284_vm1, %v276_v19  ;;  %v271_v31 = vmax.f32 %v2527_v24, %v2535_v27  ;;  %286 = vst.msk [vmem:[#allocation2 + $0x8] sm:$0xff] %vm284_vm1, %v277_v25  ;;  %v272_v36 = vmax.f32 %v2528_v33, %v2536_v34  ;;  %v273_v42 = vmax.f32 %v2529_v38, %v2537_v39  ;;  %v231_v43 = vld [vmem:[%s3102_s29 + $0x30] sm:$0xff]  ;;  %v232_v49 = vld [vmem:[%s3102_s29 + $0x38] sm:$0xff] }
  0x19   : > { %287 = vst.msk [vmem:[#allocation2 + $0x10] sm:$0xff] %vm284_vm1, %v278_v30  ;;  %v2522_v44 = vld [vmem:[%s3102_s29 + $0x70] sm:$0xff]  ;;  %v2523_v50 = vld [vmem:[%s3102_s29 + $0x78] sm:$0xff]  ;;  %v2603_v24 = vld [vmem:[%s3355_s1 + $0x20] sm:$0xf] }
  0x1a   : > { %v279_v40 = vmax.f32 %v245_v26, %v271_v31  ;;  %v2530_v45 = vld [vmem:[%s3102_s29 + $0xb0] sm:$0xff]  ;;  %v280_v46 = vmax.f32 %v246_v32, %v272_v36  ;;  %v248_v47 = vmax.f32 %v231_v43, %v2522_v44  ;;  %v281_v51 = vmax.f32 %v247_v41, %v273_v42  ;;  %v2531_v54 = vld [vmem:[%s3102_s29 + $0xb8] sm:$0xff]  ;;  %v2612_v31 = vld [vmem:[%s3357_s3 + $0x8] sm:$0xff] }
  0x1b   : > { %v2538_v48 = vld [vmem:[%s3102_s29 + $0xf0] sm:$0xff]  ;;  %v249_v53 = vmax.f32 %v232_v49, %v2523_v50  ;;  %v2539_v55 = vld [vmem:[%s3102_s29 + $0xf8] sm:$0xff]  ;;  %v1482_v32 = vld [vmem:[%s3357_s3] sm:$0xff] }
  0x1c   : > { %288 = vst.msk [vmem:[#allocation2 + $0x18] sm:$0xff] %vm284_vm1, %v279_v40  ;;  %v274_v52 = vmax.f32 %v2530_v45, %v2538_v48  ;;  %289 = vst.msk [vmem:[#allocation2 + $0x20] sm:$0xff] %vm284_vm1, %v280_v46  ;;  %v275_v56 = vmax.f32 %v2531_v54, %v2539_v55  ;;  %v2571_v7 = vld [vmem:[%s3355_s1 + $0x10] sm:$0xf]  ;;  %v2579_v15 = vld [vmem:[%s3355_s1 + $0x14] sm:$0xf] }
  0x1d   : > { %290 = vst.msk [vmem:[#allocation2 + $0x28] sm:$0xff] %vm284_vm1, %v281_v51  ;;  %v2587_v18 = vld [vmem:[%s3355_s1 + $0x18] sm:$0xf]  ;;  %v2595_v21 = vld [vmem:[%s3355_s1 + $0x1c] sm:$0xf] }
  0x1e   : > { %v282_v57 = vmax.f32 %v248_v47, %v274_v52  ;;  %v283_v60 = vmax.f32 %v249_v53, %v275_v56  ;;  %v2611_v40 = vld [vmem:[%s3356_s2] ss:$0 sm:$0xff] }
  0x1f   : > { %v293_v58 = vld [vmem:[#allocation2] sm:$0xff]  ;;  %v294_v61 = vld [vmem:[#allocation2 + $0x8] sm:$0xff] }
  0x20   : > { %2782 = vmatprep.mubr.msk.f32.mxu0 %vm284_vm1, %v293_v58  ;;  %v541_v62 = vld [vmem:[#allocation2 + $0x2] sm:$0xff]  ;;  %291 = vst.msk [vmem:[#allocation2 + $0x30] sm:$0xff] %vm284_vm1, %v282_v57  ;;  %292 = vst.msk [vmem:[#allocation2 + $0x38] sm:$0xff] %vm284_vm1, %v283_v60  ;;  %v542_v4 = vld [vmem:[#allocation2 + $0xa] sm:$0xff] }
  0x21   : > { %v300_v63 = vld [vmem:[#allocation2 + $0x1] sm:$0xff]  ;;  %2783 = vmatmul.mubr.msk.f32.vlgmr.msra.gmra.mrb[0].mxu0 %vm284_vm1, %v294_v61  ;;  %v801_v2 = vld [vmem:[#allocation2 + $0x9] sm:$0xff] }
  0x22   : > { %2771 = vmatprep.mubr.msk.f32.mxu1 %vm284_vm1, %v300_v63  ;;  %2792 = vmatpush3.msk.msra.mxu0 %vm326_vm0, %v3086_v1  ;;  %v672_v10 = vld [vmem:[#allocation2 + $0x10] sm:$0xff] }
  0x23   : > { %2793 = vmatprep.mubr.msk.f32.mxu0 %vm284_vm1, %v541_v62  ;;  %2802 = vmatprep.subr.msk.mxu0 %vm326_vm0, %v2563_v59  ;;  %v3157_v3 = vld [vmem:[#allocation2 + $0x11] sm:$0xff]  ;;  %v3164_v5 = vld [vmem:[#allocation2 + $0x19] sm:$0xff] }
  0x24   : > { %2772 = vmatmul.mubr.msk.f32.vlgmr.msra.gmra.mrb[0].mxu1 %vm284_vm1, %v801_v2  ;;  %v3166_v6 = vld [vmem:[#allocation2 + $0x12] sm:$0xff]  ;;  %v3168_v1 = vld [vmem:[#allocation2 + $0x21] sm:$0xff]  ;;  %v305_v8 = vld [vmem:[#allocation2 + $0x29] sm:$0x3f] }
  0x25   : > { %2774 = vmatprep.mubr.msk.f32.mxu1 %vm284_vm1, %v3157_v3  ;;  %2941 = vmatpush3.msk.msra.mxu1 %vm326_vm0, %v3079_v0  ;;  %v3181_v0 = vld [vmem:[#allocation2 + $0x1a] sm:$0xff]  ;;  %v3183_v9 = vld [vmem:[#allocation2 + $0x22] sm:$0xff]  ;;  %v546_v11 = vld [vmem:[#allocation2 + $0x2a] sm:$0x3f] }
  0x26   : > { %v673_v12 = vld [vmem:[#allocation2 + $0x18] sm:$0xff]  ;;  %v674_v13 = vld [vmem:[#allocation2 + $0x20] sm:$0xff]  ;;  %v298_v14 = vld [vmem:[#allocation2 + $0x28] sm:$0x3f]  ;;  %2868 = vmatprep.subr.mxu1 %v2612_v31 }
  0x27   : > { %v675_v16 = vld [vmem:[#allocation2 + $0x28] sm:$0xff]  ;;  %v676_v17 = vld [vmem:[#allocation2 + $0x30] sm:$0x3f]  ;;  %v1066_v26 = vld [vmem:[#allocation2 + $0x38] sm:$0x3f] }
  0x28   : > { %2775 = vmatmul.mubr.msk.f32.gmra.mrb[2].mxu1 %vm284_vm1, %v3164_v5  ;;  %v805_v19 = vld [vmem:[#allocation2 + $0x29] sm:$0xff]  ;;  %v806_v20 = vld [vmem:[#allocation2 + $0x31] sm:$0x3f]  ;;  %v1196_v28 = vld [vmem:[#allocation2 + $0x39] sm:$0x3f] }
  0x29   : > { %2777 = vmatprep.mubr.msk.f32.mxu1 %vm284_vm1, %v3168_v1  ;;  %2794 = vmatmul.mubr.msk.f32.vlgmr.msra.gmra.mrb[0].mxu0 %vm284_vm1, %v542_v4  ;;  %v935_v22 = vld [vmem:[#allocation2 + $0x2a] sm:$0xff]  ;;  %v936_v23 = vld [vmem:[#allocation2 + $0x32] sm:$0x3f]  ;;  %v1326_v30 = vld [vmem:[#allocation2 + $0x3a] sm:$0x3f] }
  0x2a   : > { %2803 = vmatpush3.msk.msra.mxu0 %vm326_vm0, %v2563_v59  ;;  %2796 = vmatprep.mubr.msk.f32.mxu0 %vm284_vm1, %v3166_v6  ;;  %v1065_v25 = vld [vmem:[#allocation2 + $0x30] sm:$0xff] }
  0x2b   : > { %2813 = vmatprep.subr.msk.mxu0 %vm326_vm0, %v2571_v7  ;;  %v1195_v27 = vld [vmem:[#allocation2 + $0x31] sm:$0xff] }
  0x2c   : > { %2778 = vmatmul.mubr.msk.f32.gmra.mrb[4].mxu1 %vm284_vm1, %v305_v8  ;;  %v1325_v29 = vld [vmem:[#allocation2 + $0x32] sm:$0xff] }
  0x2d   : > { %2785 = vmatprep.mubr.msk.f32.mxu1 %vm284_vm1, %v672_v10  ;;  %2797 = vmatmul.mubr.msk.f32.gmra.mrb[2].mxu0 %vm284_vm1, %v3181_v0  ;;  %v2626_v8 = vld [vmem:[%s3357_s3 + $0x18] sm:$0xff] }
  0x2e   : > { %2799 = vmatprep.mubr.msk.f32.mxu0 %vm284_vm1, %v3183_v9 }
  0x30   : > { %2786 = vmatmul.mubr.msk.f32.vlgmr.msra.gmra.mrb[2].mxu1 %vm284_vm1, %v673_v12 }
  0x31   : > { %2788 = vmatprep.mubr.msk.f32.mxu1 %vm284_vm1, %v674_v13  ;;  %2800 = vmatmul.mubr.msk.f32.gmra.mrb[4].mxu0 %vm284_vm1, %v546_v11 }
  0x32   : > { %2804 = vmatprep.mubr.msk.f32.mxu0 %vm284_vm1, %v294_v61  ;;  %2869 = vmatpush3.msra.mxu1 %v2612_v31  ;;  %v2656_v31 = vld [vmem:[%s3358_s4] ss:$0 sm:$0xff] }
  0x33   : > { %2876 = vmatprep.subr.mxu1 %v1482_v32 }
  0x34   : > { %2789 = vmatmul.mubr.msk.f32.gmra.mrb[4].mxu1 %vm284_vm1, %v298_v14 }
  0x35   : > { %2805 = vmatmul.mubr.msk.f32.vlgmr.msra.gmra.mrb[0].mxu0 %vm284_vm1, %v672_v10 }
  0x36   : > { %2814 = vmatpush3.msk.msra.mxu0 %vm326_vm0, %v2571_v7  ;;  %2807 = vmatprep.mubr.msk.f32.mxu0 %vm284_vm1, %v673_v12 }
  0x37   : > { %2824 = vmatprep.subr.msk.mxu0 %vm326_vm0, %v2579_v15 }
  0x39   : > { %2808 = vmatmul.mubr.msk.f32.gmra.mrb[2].mxu0 %vm284_vm1, %v674_v13 }
  0x3a   : > { %2810 = vmatprep.mubr.msk.f32.mxu0 %vm284_vm1, %v675_v16 }
  0x3d   : > { %2811 = vmatmul.mubr.msk.f32.gmra.mrb[4].mxu0 %vm284_vm1, %v676_v17 }
  0x3e   : > { %2815 = vmatprep.mubr.msk.f32.mxu0 %vm284_vm1, %v801_v2 }
  0x41   : > { %2816 = vmatmul.mubr.msk.f32.vlgmr.msra.gmra.mrb[0].mxu0 %vm284_vm1, %v3157_v3 }
  0x42   : > { %2825 = vmatpush3.msk.msra.mxu0 %vm326_vm0, %v2579_v15  ;;  %2818 = vmatprep.mubr.msk.f32.mxu0 %vm284_vm1, %v3164_v5  ;;  %v2636_v15 = vld [vmem:[%s3357_s3 + $0x28] sm:$0xff] }
  0x43   : > { %2835 = vmatprep.subr.msk.mxu0 %vm326_vm0, %v2587_v18 }
  0x45   : > { %2819 = vmatmul.mubr.msk.f32.gmra.mrb[2].mxu0 %vm284_vm1, %v3168_v1 }
  0x46   : > { %2821 = vmatprep.mubr.msk.f32.mxu0 %vm284_vm1, %v805_v19 }
  0x49   : > { %2822 = vmatmul.mubr.msk.f32.gmra.mrb[4].mxu0 %vm284_vm1, %v806_v20 }
  0x4a   : > { %2826 = vmatprep.mubr.msk.f32.mxu0 %vm284_vm1, %v542_v4 }
  0x4d   : > { %2827 = vmatmul.mubr.msk.f32.vlgmr.msra.gmra.mrb[0].mxu0 %vm284_vm1, %v3166_v6 }
  0x4e   : > { %2836 = vmatpush3.msk.msra.mxu0 %vm326_vm0, %v2587_v18  ;;  %2829 = vmatprep.mubr.msk.f32.mxu0 %vm284_vm1, %v3181_v0  ;;  %v2641_v18 = vld [vmem:[%s3357_s3 + $0x30] sm:$0xff] }
  0x4f   : > { %2846 = vmatprep.subr.msk.mxu0 %vm326_vm0, %v2595_v21 }
  0x51   : > { %2830 = vmatmul.mubr.msk.f32.gmra.mrb[2].mxu0 %vm284_vm1, %v3183_v9 }
  0x52   : > { %2832 = vmatprep.mubr.msk.f32.mxu0 %vm284_vm1, %v935_v22 }
  0x55   : > { %2833 = vmatmul.mubr.msk.f32.gmra.mrb[4].mxu0 %vm284_vm1, %v936_v23 }
  0x56   : > { %2837 = vmatprep.mubr.msk.f32.mxu0 %vm284_vm1, %v672_v10 }
  0x59   : > { %2838 = vmatmul.mubr.msk.f32.vlgmr.msra.gmra.mrb[0].mxu0 %vm284_vm1, %v673_v12  ;;  %v2631_v12 = vld [vmem:[%s3357_s3 + $0x20] sm:$0xff] }
  0x5a   : > { %2847 = vmatpush3.msk.msra.mxu0 %vm326_vm0, %v2595_v21  ;;  %2840 = vmatprep.mubr.msk.f32.mxu0 %vm284_vm1, %v674_v13  ;;  %v2646_v21 = vld [vmem:[%s3357_s3 + $0x38] sm:$0xff] }
  0x5b   : > { %2857 = vmatprep.subr.msk.mxu0 %vm326_vm0, %v2603_v24 }
  0x5d   : > { %2841 = vmatmul.mubr.msk.f32.gmra.mrb[2].mxu0 %vm284_vm1, %v675_v16 }
  0x5e   : > { %2843 = vmatprep.mubr.msk.f32.mxu0 %vm284_vm1, %v1065_v25 }
  0x61   : > { %2844 = vmatmul.mubr.msk.f32.gmra.mrb[4].mxu0 %vm284_vm1, %v1066_v26 }
  0x62   : > { %2848 = vmatprep.mubr.msk.f32.mxu0 %vm284_vm1, %v3157_v3 }
  0x65   : > { %2849 = vmatmul.mubr.msk.f32.vlgmr.msra.gmra.mrb[0].mxu0 %vm284_vm1, %v3164_v5  ;;  %v2621_v5 = vld [vmem:[%s3357_s3 + $0x10] sm:$0xff] }
  0x66   : > { %2858 = vmatpush3.msk.msra.mxu0 %vm326_vm0, %v2603_v24  ;;  %2851 = vmatprep.mubr.msk.f32.mxu0 %vm284_vm1, %v3168_v1  ;;  %v2651_v24 = vld [vmem:[%s3357_s3 + $0x40] sm:$0xff] }
  0x69   : > { %2852 = vmatmul.mubr.msk.f32.gmra.mrb[2].mxu0 %vm284_vm1, %v805_v19 }
  0x6a   : > { %2854 = vmatprep.mubr.msk.f32.mxu0 %vm284_vm1, %v1195_v27 }
  0x6d   : > { %2855 = vmatmul.mubr.msk.f32.gmra.mrb[4].mxu0 %vm284_vm1, %v1196_v28 }
  0x6e   : > { %2859 = vmatprep.mubr.msk.f32.mxu0 %vm284_vm1, %v3166_v6 }
  0x71   : > { %2860 = vmatmul.mubr.msk.f32.vlgmr.msra.gmra.mrb[0].mxu0 %vm284_vm1, %v3181_v0 }
  0x72   : > { %2862 = vmatprep.mubr.msk.f32.mxu0 %vm284_vm1, %v3183_v9 }
  0x75   : > { %2863 = vmatmul.mubr.msk.f32.gmra.mrb[2].mxu0 %vm284_vm1, %v935_v22 }
  0x76   : > { %2865 = vmatprep.mubr.msk.f32.mxu0 %vm284_vm1, %v1325_v29 }
  0x79   : > { %2866 = vmatmul.mubr.msk.f32.gmra.mrb[4].mxu0 %vm284_vm1, %v1326_v30 }
  0xf7   : > { %v2773_v33 = vpop.f32.mrb[0].mxu1 }
  0xf8   : > { %v396_v34 = vpop.f32.mrb[1].mxu1 }
 0x103   : > { %v2787_v35 = vpop.f32.mrb[2].mxu1 }
 0x104   : > { %v522_v36 = vpop.f32.mrb[3].mxu1 }
 0x107   : > { %v2790_v37 = vpop.f32.mrb[4].mxu1 }
 0x108   : > { %v532_v38 = vpop.f32.mrb[5].mxu1 }
 0x144   : > { %v2861_v39 = vpop.f32.mrb[0].mxu0 }
 0x145   : > { %v2942_v41 = vadd.f32 %v2861_v39, %v2773_v33  ;;  %v1416_v42 = vpop.f32.mrb[1].mxu0 }
 0x146   : > { %v2943_v43 = vadd.f32 %v1416_v42, %v396_v34 }
 0x147   : > { %v1459_v44 = vadd.f32 %v2942_v41, %v2611_v40 }
 0x148   : > { %v1458_v45 = vadd.f32 %v2943_v43, %v2611_v40  ;;  %v2864_v46 = vpop.f32.mrb[2].mxu0 }
 0x149   : > { %v1465_v47 = vmax.f32 %v1459_v44, 0.0  ;;  %v2944_v48 = vadd.f32 %v2864_v46, %v2787_v35  ;;  %v1426_v49 = vpop.f32.mrb[3].mxu0 }
 0x14a   : > { %v1464_v50 = vmax.f32 %v1458_v45, 0.0  ;;  %v2945_v51 = vadd.f32 %v1426_v49, %v522_v36 }
 0x14b   : > { %1472 = vst.msk [vmem:[#allocation3 + $0x8] sm:$0xff] %vm1470_vm2, %v1465_v47  ;;  %v1461_v52 = vadd.f32 %v2944_v48, %v2611_v40 }
 0x14c   : > { %1471 = vst.msk [vmem:[#allocation3] sm:$0xff] %vm1470_vm2, %v1464_v50  ;;  %v1460_v53 = vadd.f32 %v2945_v51, %v2611_v40  ;;  %v2867_v54 = vpop.f32.mrb[4].mxu0 }
 0x14d   : > { %v1467_v55 = vmax.f32 %v1461_v52, 0.0  ;;  %v2946_v56 = vadd.f32 %v2867_v54, %v2790_v37  ;;  %v1436_v57 = vpop.f32.mrb[5].mxu0 }
 0x14e   : > { %v1466_v58 = vmax.f32 %v1460_v53, 0.0  ;;  %v2947_v59 = vadd.f32 %v1436_v57, %v532_v38 }
 0x14f   : > { %1474 = vst.msk [vmem:[#allocation3 + $0x18] sm:$0xff] %vm1470_vm2, %v1467_v55  ;;  %v1463_v60 = vadd.f32 %v2946_v56, %v2611_v40 }
 0x150   : > { %1473 = vst.msk [vmem:[#allocation3 + $0x10] sm:$0xff] %vm1470_vm2, %v1466_v58  ;;  %v1462_v61 = vadd.f32 %v2947_v59, %v2611_v40 }
 0x151   : > { %v1469_v62 = vmax.f32 %v1463_v60, 0.0 }
 0x152   : > { %v1468_v63 = vmax.f32 %v1462_v61, 0.0  ;;  %v1479_v7 = vld [vmem:[#allocation3 + $0x8] sm:$0xff] }
 0x153   : > { %1477 = vst.msk [vmem:[#allocation3 + $0x28] sm:$0x3f] %vm1476_vm3, %v1469_v62  ;;  %v1483_v2 = vld [vmem:[#allocation3 + $0x1] sm:$0xff] }
 0x154   : > { %1475 = vst.msk [vmem:[#allocation3 + $0x20] sm:$0xff] %vm1470_vm2, %v1468_v63  ;;  %2870 = vmatprep.mubr.msk.f32.mxu1 %vm1470_vm2, %v1483_v2  ;;  %v1478_v1 = vld [vmem:[#allocation3] sm:$0xff] }
 0x155   : > { %v1683_v10 = vld [vmem:[#allocation3 + $0x2] sm:$0xff] }
 0x156   : > { %v1486_v6 = vld [vmem:[#allocation3 + $0x19] sm:$0xf] }
 0x157   : > { %v1484_v3 = vld [vmem:[#allocation3 + $0x9] sm:$0xff]  ;;  %v3280_v4 = vld [vmem:[#allocation3 + $0x11] sm:$0xff]  ;;  %v1686_v14 = vld [vmem:[#allocation3 + $0x1a] sm:$0xf] }
 0x158   : > { %2871 = vmatmul.mubr.msk.f32.vlgmr.msra.gmra.mrb[6].mxu1 %vm1470_vm2, %v1484_v3  ;;  %v1480_v0 = vld [vmem:[#allocation3 + $0x10] sm:$0xff]  ;;  %v1481_v9 = vld [vmem:[#allocation3 + $0x18] sm:$0xf] }
 0x159   : > { %2877 = vmatpush3.msra.mxu1 %v1482_v32  ;;  %2873 = vmatprep.mubr.msk.f32.mxu1 %vm1470_vm2, %v3280_v4  ;;  %v1684_v11 = vld [vmem:[#allocation3 + $0xa] sm:$0xff]  ;;  %v1685_v13 = vld [vmem:[#allocation3 + $0x12] sm:$0xff] }
 0x15a   : > { %2884 = vmatprep.subr.mxu1 %v2621_v5  ;;  %v1792_v16 = vld [vmem:[#allocation3 + $0x18] sm:$0xff]  ;;  %v2114_v26 = vld [vmem:[#allocation3 + $0x28] sm:$0xf] }
 0x15b   : > { %v1793_v17 = vld [vmem:[#allocation3 + $0x20] sm:$0xf]  ;;  %v2221_v28 = vld [vmem:[#allocation3 + $0x29] sm:$0xf] }
 0x15c   : > { %2874 = vmatmul.mubr.msk.f32.gmra.mrb[8].mxu1 %vm1470_vm2, %v1486_v6  ;;  %v1899_v19 = vld [vmem:[#allocation3 + $0x19] sm:$0xff]  ;;  %v1900_v20 = vld [vmem:[#allocation3 + $0x21] sm:$0xf]  ;;  %v2328_v30 = vld [vmem:[#allocation3 + $0x2a] sm:$0xf] }
 0x15d   : > { %2878 = vmatprep.mubr.msk.f32.mxu1 %vm1470_vm2, %v1478_v1  ;;  %v2006_v22 = vld [vmem:[#allocation3 + $0x1a] sm:$0xff]  ;;  %v2007_v23 = vld [vmem:[#allocation3 + $0x22] sm:$0xf] }
 0x15e   : > { %v2113_v25 = vld [vmem:[#allocation3 + $0x20] sm:$0xff] }
 0x15f   : > { %v2220_v27 = vld [vmem:[#allocation3 + $0x21] sm:$0xff] }
 0x160   : > { %2879 = vmatmul.mubr.msk.f32.vlgmr.msra.gmra.mrb[6].mxu1 %vm1470_vm2, %v1479_v7  ;;  %v2327_v29 = vld [vmem:[#allocation3 + $0x22] sm:$0xff] }
 0x161   : > { %2885 = vmatpush3.msra.mxu1 %v2621_v5  ;;  %2881 = vmatprep.mubr.msk.f32.mxu1 %vm1470_vm2, %v1480_v0 }
 0x162   : > { %2892 = vmatprep.subr.mxu1 %v2626_v8 }
 0x164   : > { %2882 = vmatmul.mubr.msk.f32.gmra.mrb[8].mxu1 %vm1470_vm2, %v1481_v9 }
 0x165   : > { %2886 = vmatprep.mubr.msk.f32.mxu1 %vm1470_vm2, %v1683_v10 }
 0x168   : > { %2887 = vmatmul.mubr.msk.f32.vlgmr.msra.gmra.mrb[6].mxu1 %vm1470_vm2, %v1684_v11 }
 0x169   : > { %2893 = vmatpush3.msra.mxu1 %v2626_v8  ;;  %2889 = vmatprep.mubr.msk.f32.mxu1 %vm1470_vm2, %v1685_v13 }
 0x16a   : > { %2900 = vmatprep.subr.mxu1 %v2631_v12 }
 0x16c   : > { %2890 = vmatmul.mubr.msk.f32.gmra.mrb[8].mxu1 %vm1470_vm2, %v1686_v14 }
 0x16d   : > { %2894 = vmatprep.mubr.msk.f32.mxu1 %vm1470_vm2, %v1479_v7 }
 0x170   : > { %2895 = vmatmul.mubr.msk.f32.vlgmr.msra.gmra.mrb[6].mxu1 %vm1470_vm2, %v1480_v0 }
 0x171   : > { %2901 = vmatpush3.msra.mxu1 %v2631_v12  ;;  %2897 = vmatprep.mubr.msk.f32.mxu1 %vm1470_vm2, %v1792_v16 }
 0x172   : > { %2908 = vmatprep.subr.mxu1 %v2636_v15 }
 0x174   : > { %2898 = vmatmul.mubr.msk.f32.gmra.mrb[8].mxu1 %vm1470_vm2, %v1793_v17 }
 0x175   : > { %2902 = vmatprep.mubr.msk.f32.mxu1 %vm1470_vm2, %v1484_v3 }
 0x178   : > { %2903 = vmatmul.mubr.msk.f32.vlgmr.msra.gmra.mrb[6].mxu1 %vm1470_vm2, %v3280_v4 }
 0x179   : > { %2909 = vmatpush3.msra.mxu1 %v2636_v15  ;;  %2905 = vmatprep.mubr.msk.f32.mxu1 %vm1470_vm2, %v1899_v19 }
 0x17a   : > { %2916 = vmatprep.subr.mxu1 %v2641_v18 }
 0x17c   : > { %2906 = vmatmul.mubr.msk.f32.gmra.mrb[8].mxu1 %vm1470_vm2, %v1900_v20 }
 0x17d   : > { %2910 = vmatprep.mubr.msk.f32.mxu1 %vm1470_vm2, %v1684_v11 }
 0x180   : > { %2911 = vmatmul.mubr.msk.f32.vlgmr.msra.gmra.mrb[6].mxu1 %vm1470_vm2, %v1685_v13 }
 0x181   : > { %2917 = vmatpush3.msra.mxu1 %v2641_v18  ;;  %2913 = vmatprep.mubr.msk.f32.mxu1 %vm1470_vm2, %v2006_v22 }
 0x182   : > { %2924 = vmatprep.subr.mxu1 %v2646_v21 }
 0x184   : > { %2914 = vmatmul.mubr.msk.f32.gmra.mrb[8].mxu1 %vm1470_vm2, %v2007_v23 }
 0x185   : > { %2918 = vmatprep.mubr.msk.f32.mxu1 %vm1470_vm2, %v1480_v0 }
 0x188   : > { %2919 = vmatmul.mubr.msk.f32.vlgmr.msra.gmra.mrb[6].mxu1 %vm1470_vm2, %v1792_v16 }
 0x189   : > { %2925 = vmatpush3.msra.mxu1 %v2646_v21  ;;  %2921 = vmatprep.mubr.msk.f32.mxu1 %vm1470_vm2, %v2113_v25 }
 0x18a   : > { %2932 = vmatprep.subr.mxu1 %v2651_v24 }
 0x18c   : > { %2922 = vmatmul.mubr.msk.f32.gmra.mrb[8].mxu1 %vm1470_vm2, %v2114_v26 }
 0x18d   : > { %2926 = vmatprep.mubr.msk.f32.mxu1 %vm1470_vm2, %v3280_v4 }
 0x190   : > { %2927 = vmatmul.mubr.msk.f32.vlgmr.msra.gmra.mrb[6].mxu1 %vm1470_vm2, %v1899_v19 }
 0x191   : > { %2933 = vmatpush3.msra.mxu1 %v2651_v24  ;;  %2929 = vmatprep.mubr.msk.f32.mxu1 %vm1470_vm2, %v2220_v27 }
 0x194   : > { %2930 = vmatmul.mubr.msk.f32.gmra.mrb[8].mxu1 %vm1470_vm2, %v2221_v28 }
 0x195   : > { %2934 = vmatprep.mubr.msk.f32.mxu1 %vm1470_vm2, %v1685_v13 }
 0x198   : > { %2935 = vmatmul.mubr.msk.f32.vlgmr.msra.gmra.mrb[6].mxu1 %vm1470_vm2, %v2006_v22 }
 0x199   : > { %2937 = vmatprep.mubr.msk.f32.mxu1 %vm1470_vm2, %v2327_v29 }
 0x19c   : > { %2938 = vmatmul.mubr.msk.f32.gmra.mrb[8].mxu1 %vm1470_vm2, %v2328_v30 }
 0x26b   : > { %v2936_v32 = vpop.f32.mrb[6].mxu1 }
 0x26c   : > { %v2440_v33 = vadd.f32 %v2936_v32, %v2656_v31  ;;  %v2409_v34 = vpop.f32.mrb[7].mxu1 }
 0x26d   : > { %v2439_v35 = vadd.f32 %v2656_v31, %v2409_v34 }
 0x26e   : > { %v2444_v36 = vmax.f32 %v2440_v33, 0.0 }
 0x26f   : > { %v2443_v37 = vmax.f32 %v2439_v35, 0.0  ;;  %v2939_v38 = vpop.f32.mrb[8].mxu1 }
 0x270   : > { %2448 = vst.msk [vmem:[%s224_s21 + $0x8] sm:$0xff] %vm1470_vm2, %v2444_v36  ;;  %v2442_v39 = vadd.f32 %v2939_v38, %v2656_v31  ;;  %v2419_v40 = vpop.f32.mrb[9].mxu1 }
 0x271   : > { %2447 = vst.msk [vmem:[%s224_s21] sm:$0xff] %vm1470_vm2, %v2443_v37  ;;  %v2441_v41 = vadd.f32 %v2656_v31, %v2419_v40 }
 0x272   : > { %v2446_v42 = vmax.f32 %v2442_v39, 0.0 }
 0x273   : > { %v2445_v43 = vmax.f32 %v2441_v41, 0.0 }
 0x274   : > { %2451 = vst.msk [vmem:[%s224_s21 + $0x18] sm:$0xf] %vm2450_vm4, %v2446_v42 }
 0x275   : > { %2449 = vst.msk [vmem:[%s224_s21 + $0x10] sm:$0xff] %vm1470_vm2, %v2445_v43 }
 0x276 PF: > { %s15_s18 = sadd.s32 1, %s3036_s18  }
 0x277   : > { %p12_p4 = scmp.ge.s32.totalorder %s15_s18, 4  }
 0x279   :  { %14 = sbr.rel (!%p12_p4) target bundleno = 1 (0x1), region = 89 }

</bundles_post_ra>
